<compile_context>
chip_gen: v7x
topology: tpu7x:2x2x1
jax: 0.10.0
libtpu: 0.0.40
codegen_flags: <defaults>
</compile_context>

<pallas_src>
import jax
import jax.numpy as jnp
from jax.experimental import pallas as pl
from jax.experimental.pallas import tpu as pltpu

_LANES = 128
_SUBLANES = 8
_MAX_TILE_ROWS = 2048   # (2048, 128) f32 block = 1 MiB; 2 inputs x 2 buffers + acc ~ 5 MiB VMEM
_NCORES = 2             # shard the reduction across 2 TensorCores when possible (v7x);
                        # a size-2 "parallel" axis is a harmless serial loop on 1-TC chips


def _sse_kernel(res_ref, gts_ref, out_ref, acc_ref):
    """Streaming sum-of-squared-error.

    Grid = (cores, steps).  acc_ref is a full-tile VMEM f32 accumulator so the inner
    loop is pure VPU work (no per-step cross-lane reduction, no loop-carried scalar
    dependency).  The row reduction happens once on the last step, producing 128
    per-lane partial sums per core; the tiny final lane sum is done in the wrapper.
    """
    step = pl.program_id(1)

    @pl.when(step == 0)
    def _():
        acc_ref[...] = jnp.zeros_like(acc_ref)

    diff = res_ref[...].astype(jnp.float32) - gts_ref[...].astype(jnp.float32)
    acc_ref[...] += diff * diff

    @pl.when(step == pl.num_programs(1) - 1)
    def _():
        out_ref[...] = jnp.sum(acc_ref[...], axis=0, keepdims=True)


def _sse_pallas(res2d, gts2d, tile_rows, steps_per_core, ncores):
    """res2d / gts2d: [ncores * steps_per_core * tile_rows, 128].

    Returns (1, ncores * 128) f32 per-lane partial sums.
    """

    def row_block(c, i):
        return (c * steps_per_core + i, 0)

    return pl.pallas_call(
        _sse_kernel,
        out_shape=jax.ShapeDtypeStruct((1, ncores * _LANES), jnp.float32),
        grid_spec=pltpu.PrefetchScalarGridSpec(
            num_scalar_prefetch=0,
            grid=(ncores, steps_per_core),
            in_specs=[
                pl.BlockSpec((tile_rows, _LANES), row_block),
                pl.BlockSpec((tile_rows, _LANES), row_block),
            ],
            out_specs=pl.BlockSpec((1, _LANES), lambda c, i: (0, c)),
            scratch_shapes=[pltpu.VMEM((tile_rows, _LANES), jnp.float32)],
        ),
        compiler_params=pltpu.CompilerParams(
            # leading axis: independent per-core partials (megacore); trailing: reduction
            dimension_semantics=("parallel", "arbitrary"),
        ),
    )(res2d, gts2d)


def _split_main_tail(x, main_rows):
    """View x as ([main_rows, 128] slab, flat tail). Zero-copy when main covers everything."""
    flat = jnp.reshape(x, (-1,))
    main = None
    if main_rows > 0:
        # full-extent slice in the common (divisible) case -> no extra HBM copy
        main = jnp.reshape(flat[: main_rows * _LANES], (main_rows, _LANES))
    tail = flat[main_rows * _LANES:]
    return main, tail


@jax.jit
def _psnr_from_images(result, gts):
    total = result.size                 # static under jit tracing
    n_rows = total // _LANES

    tile_rows = min(_MAX_TILE_ROWS, (n_rows // _SUBLANES) * _SUBLANES)
    if tile_rows >= _SUBLANES:
        ncores = _NCORES if n_rows >= _NCORES * tile_rows else 1
        steps_per_core = n_rows // (tile_rows * ncores)
        main_rows = steps_per_core * tile_rows * ncores
    else:
        ncores = 1
        steps_per_core = 0
        main_rows = 0

    res_main, res_tail = _split_main_tail(result, main_rows)
    gts_main, gts_tail = _split_main_tail(gts, main_rows)

    sse = jnp.float32(0.0)
    if main_rows > 0:
        partials = _sse_pallas(res_main, gts_main, tile_rows, steps_per_core, ncores)
        sse = sse + jnp.sum(partials)
    if total - main_rows * _LANES > 0:
        # TODO(synk): remainder (< 2 * tile_rows * 128 elements) handled in plain JAX to
        #             keep the Pallas main path copy-free; negligible vs. the streamed bulk.
        d = res_tail.astype(jnp.float32) - gts_tail.astype(jnp.float32)
        sse = sse + jnp.sum(d * d)

    mse = sse / jnp.float32(total)
    psnr = 10.0 * jnp.log10(jnp.float32(255.0 ** 2) / jnp.maximum(mse, 1e-10))
    return psnr


class IBenchmark:
    """JAX/Pallas port of benchmarks/IBenchmark.py (PSNR-style concrete metric)."""

    def __init__(self, args=None):
        self.args = args
        self.benchmarkDict = dict()

    @staticmethod
    def checkInput(data):
        assert 'result' in data and 'gts' in data, \
            'Benchmark input should include inputs and gts keys.'
        assert data['result'].shape == data['gts'].shape, \
            'input and ground truth tensor shape should be equal.'

    def forward(self, data):
        self.checkInput(data)
        # dtype is preserved (uint8 / bf16 inputs cut HBM traffic); upcast happens in-kernel
        psnr = _psnr_from_images(jnp.asarray(data['result']), jnp.asarray(data['gts']))
        self.fillBenchmarkDict(psnr)
        return self.benchmarkDict

    __call__ = forward

    def fillBenchmarkDict(self, result):
        self.benchmarkDict = {
            'result': result,
            'bench_name': 'PSNR',
            'compare_func': 'max',
            'max_value': 100.0,
            'min_value': 0.0,
            'describe_text': 'Peak signal-to-noise ratio between result and gts (range [0, 255]).',
        }


if __name__ == "__main__":
    key = jax.random.PRNGKey(0)
    k1, k2 = jax.random.split(key)
    # NCHW inputs in [0, 255], small shapes: batch=2, channels=4, spatial=16x16
    result = jax.random.uniform(k1, (2, 4, 16, 16), jnp.float32, 0.0, 255.0)
    noise = jax.random.normal(k2, (2, 4, 16, 16), jnp.float32) * 5.0
    gts = jnp.clip(result + noise, 0.0, 255.0)

    bench = IBenchmark(args=None)
    out = bench({'result': result, 'gts': gts})
    psnr_val = jax.block_until_ready(out['result'])

    # cross-check against plain JAX reference
    mse_ref = jnp.mean((result - gts) ** 2)
    psnr_ref = 10.0 * jnp.log10(255.0 ** 2 / mse_ref)
    assert jnp.allclose(psnr_val, psnr_ref, rtol=1e-4, atol=1e-3), (psnr_val, psnr_ref)

    print("KERNEL_OK")
</pallas_src>

<mosaic_0001>
module attributes {stable_mosaic.version = 11 : i64} {
  func.func @_sse_kernel(%arg0: i32, %arg1: i32, %arg2: memref<16x128xf32, #tpu.memory_space<vmem>>, %arg3: memref<16x128xf32, #tpu.memory_space<vmem>>, %arg4: memref<1x128xf32, #tpu.memory_space<vmem>>, %arg5: memref<16x128xf32, #tpu.memory_space<vmem>>) attributes {dimension_semantics = [#tpu.dimension_semantics<parallel>, #tpu.dimension_semantics<arbitrary>], iteration_bounds = array<i64: 1, 1>, scalar_prefetch = 0 : i64, scratch_operands = 1 : i64, tpu.core_type = #tpu.core_type<tc>, window_params = [{transform_indices = @transform_0, window_bounds = array<i64: 16, 128>}, {transform_indices = @transform_1, window_bounds = array<i64: 16, 128>}, {transform_indices = @transform_2, window_bounds = array<i64: 1, 128>}]} {
    %c0_i32 = arith.constant 0 : i32
    %0 = arith.cmpi eq, %arg1, %c0_i32 : i32
    %1 = arith.extui %0 : i1 to i32
    %c0_i32_0 = arith.constant 0 : i32
    %2 = arith.cmpi ne, %1, %c0_i32_0 : i32
    scf.if %2 {
      %cst = arith.constant 0.000000e+00 : f32
      %13 = vector.broadcast %cst : f32 to vector<16x128xf32>
      %c0_10 = arith.constant 0 : index
      %c0_11 = arith.constant 0 : index
      %14 = vector.load %arg5[%c0_10, %c0_11] : memref<16x128xf32, #tpu.memory_space<vmem>>, vector<16x128xf32>
      tpu.vector_store %arg5[%c0_10, %c0_11], %13 {strides = array<i32>} : memref<16x128xf32, #tpu.memory_space<vmem>>, vector<16x128xf32>,
    } else {
    }
    %c0 = arith.constant 0 : index
    %c0_1 = arith.constant 0 : index
    %3 = vector.load %arg2[%c0, %c0_1] : memref<16x128xf32, #tpu.memory_space<vmem>>, vector<16x128xf32>
    %c0_2 = arith.constant 0 : index
    %c0_3 = arith.constant 0 : index
    %4 = vector.load %arg3[%c0_2, %c0_3] : memref<16x128xf32, #tpu.memory_space<vmem>>, vector<16x128xf32>
    %5 = arith.subf %3, %4 : vector<16x128xf32>
    %c0_4 = arith.constant 0 : index
    %c0_5 = arith.constant 0 : index
    %6 = vector.load %arg5[%c0_4, %c0_5] : memref<16x128xf32, #tpu.memory_space<vmem>>, vector<16x128xf32>
    %7 = arith.mulf %5, %5 : vector<16x128xf32>
    %8 = arith.addf %6, %7 : vector<16x128xf32>
    %c0_6 = arith.constant 0 : index
    %c0_7 = arith.constant 0 : index
    %9 = vector.load %arg5[%c0_6, %c0_7] : memref<16x128xf32, #tpu.memory_space<vmem>>, vector<16x128xf32>
    tpu.vector_store %arg5[%c0_6, %c0_7], %8 {strides = array<i32>} : memref<16x128xf32, #tpu.memory_space<vmem>>, vector<16x128xf32>,
    %c0_i32_8 = arith.constant 0 : i32
    %10 = arith.cmpi eq, %arg1, %c0_i32_8 : i32
    %11 = arith.extui %10 : i1 to i32
    %c0_i32_9 = arith.constant 0 : i32
    %12 = arith.cmpi ne, %11, %c0_i32_9 : i32
    scf.if %12 {
      %c0_10 = arith.constant 0 : index
      %c0_11 = arith.constant 0 : index
      %13 = vector.load %arg5[%c0_10, %c0_11] : memref<16x128xf32, #tpu.memory_space<vmem>>, vector<16x128xf32>
      %cst = arith.constant dense<0.000000e+00> : vector<128xf32>
      %14 = vector.multi_reduction <add>, %13, %cst [0] : vector<16x128xf32> to vector<128xf32>
      %15 = vector.shape_cast %14 : vector<128xf32> to vector<1x128xf32>
      %c0_12 = arith.constant 0 : index
      %c0_13 = arith.constant 0 : index
      %16 = vector.load %arg4[%c0_12, %c0_13] : memref<1x128xf32, #tpu.memory_space<vmem>>, vector<1x128xf32>
      tpu.vector_store %arg4[%c0_12, %c0_13], %15 {strides = array<i32>} : memref<1x128xf32, #tpu.memory_space<vmem>>, vector<1x128xf32>,
    } else {
    }
    return
  }
  func.func @transform_0(%arg0: i32, %arg1: i32) -> (i32, i32) {
    %c1_i32 = arith.constant 1 : i32
    %0 = arith.muli %arg0, %c1_i32 : i32
    %1 = arith.addi %0, %arg1 : i32
    %c0_i32 = arith.constant 0 : i32
    %c0_i32_0 = arith.constant 0 : i32
    return %1, %c0_i32 : i32, i32
  }
  func.func @transform_1(%arg0: i32, %arg1: i32) -> (i32, i32) {
    %c1_i32 = arith.constant 1 : i32
    %0 = arith.muli %arg0, %c1_i32 : i32
    %1 = arith.addi %0, %arg1 : i32
    %c0_i32 = arith.constant 0 : i32
    %c0_i32_0 = arith.constant 0 : i32
    return %1, %c0_i32 : i32, i32
  }
  func.func @transform_2(%arg0: i32, %arg1: i32) -> (i32, i32) {
    %c0_i32 = arith.constant 0 : i32
    %c0_i32_0 = arith.constant 0 : i32
    return %c0_i32, %arg0 : i32, i32
  }
}

</mosaic_0001>

<bundles_post_ra>
// kernel: _psnr_from_images.1
= control target key start
LH: loop header
LB: loop body
LE: loop exit
PB: predicated region body
PF: predicated region fallthrough
CT: control target
= control target key end

     0   :  { %s134_s0 = inlined_call_operand.vmem [shape: f32[16,128], index: 0, kind: input, shape index: {}]   ;;  %s135_s1 = inlined_call_operand.vmem [shape: f32[16,128], index: 1, kind: input, shape index: {}]   ;;  %s136_s2 = inlined_call_operand.vmem [shape: f32[1,128], index: 2, kind: output, shape index: {}]  }
   0x1   :  { %v61_v0 = vld [vmem:[%s134_s0] sm:$0xff]  ;;  %v62_v1 = vld [vmem:[%s134_s0 + $0x8] sm:$0xff] }
   0x2   :  { %v63_v2 = vld [vmem:[%s135_s1] sm:$0xff]  ;;  %v64_v3 = vld [vmem:[%s135_s1 + $0x8] sm:$0xff] }
   0x3   :  { %v65_v4 = vsub.f32 %v61_v0, %v63_v2  ;;  %v66_v5 = vsub.f32 %v62_v1, %v64_v3 }
   0x5   :  { %v69_v6 = vmul.f32 %v65_v4, %v65_v4  ;;  %v70_v7 = vmul.f32 %v66_v5, %v66_v5 }
   0x7   :  { %v80_v8 = vadd.f32 %v70_v7, %v69_v6 }
   0x9   :  { %v81_v9 = vrot.slane %v80_v8, 4 }
   0xb   :  { %v82_v10 = vadd.f32 %v81_v9, %v80_v8 }
   0xd   :  { %v83_v11 = vrot.slane %v82_v10, 2 }
   0xf   :  { %v84_v12 = vadd.f32 %v83_v11, %v82_v10 }
  0x11   :  { %v85_v13 = vrot.slane %v84_v12, 1 }
  0x13   :  { %v86_v14 = vadd.f32 %v85_v13, %v84_v12 }
  0x15   :  { %87 = vst [vmem:[%s136_s2] sm:$0x1] %v86_v14 }

</bundles_post_ra>
